<compile_context>
chip_gen: v6e
topology: v6e:2x2x1
jax: 0.10.0
libtpu: 0.0.40
codegen_flags: <defaults>
</compile_context>

<pallas_src>
import jax
import jax.numpy as jnp
import numpy as np
from jax.experimental import pallas as pl
from jax.experimental.pallas import tpu as pltpu

_TARGET_BLOCK_BYTES = 4 * 1024 * 1024   # ~4 MiB per x block in VMEM (padded)
_VMEM_LIMIT_BYTES = 48 * 1024 * 1024


def _round_down(v: int, m: int) -> int:
    return (v // m) * m


def _drop_path_kernel(scale_ref, x_ref, o_ref):
    # scale_ref: (TILE_B, 1) f32 -- 0.0 for dropped samples, 1/keep_prob else.
    # Cast the tiny scale column to the native dtype so the big multiply stays
    # packed (bf16) on the VPU, then broadcast along lanes.
    scale = scale_ref[...].astype(x_ref.dtype)
    o_ref[...] = x_ref[...] * scale


def drop_path_pallas(x: jax.Array, drop_prob: float, seed: int,
                     training: bool = True, donate_x: bool = False):
    """Pallas DropPath.  Identity when drop_prob == 0 or not training.

    NOTE: use a distinct `seed` per layer / call; reusing the same seed gives
    identical keep masks for every DropPath in the network.
    """
    if drop_prob == 0.0 or not training:
        return x
    keep_prob = 1.0 - float(drop_prob)
    if keep_prob <= 0.0:
        # Everything dropped.  (The torch reference would produce inf*0 = nan
        # here; we follow the usual stochastic-depth convention instead.)
        return jnp.zeros_like(x)

    B = x.shape[0]
    N = int(np.prod(x.shape[1:])) if x.ndim > 1 else 1
    itemsize = jnp.dtype(x.dtype).itemsize
    sub_align = max(8, 32 // itemsize)          # sublane packing: 8 f32, 16 bf16

    # Per-sample scale: floor(keep_prob + U[0,1)) / keep_prob -> 0 or 1/keep_prob.
    u = jax.random.uniform(jax.random.PRNGKey(seed), (B,), dtype=jnp.float32)
    keep = jnp.floor(jnp.float32(keep_prob) + u)
    scale = (keep * jnp.float32(1.0 / keep_prob)).reshape(B, 1)     # (B, 1) f32

    x_flat = x.reshape(B, N)                    # contiguous reshape: no HBM copy

    # ---- Block sizing -------------------------------------------------------
    # Lane (last-dim) tile: multiple of 128, or the full (small) dim.
    if N >= 128:
        max_lanes = max(
            128, _round_down(_TARGET_BLOCK_BYTES // (sub_align * itemsize), 128))
        tile_n = min(_round_down(N, 128), max_lanes)
    else:
        tile_n = N                              # equals the full array dim
    # Sublane (batch) tile: multiple of the packing granularity, or full B.
    if B >= sub_align:
        want_b = max(
            sub_align,
            _round_down(_TARGET_BLOCK_BYTES // (tile_n * itemsize), sub_align))
        tile_b = min(_round_down(B, sub_align), want_b)
    else:
        tile_b = B                              # equals the full array dim

    grid = (pl.cdiv(B, tile_b), pl.cdiv(N, tile_n))

    out_flat = pl.pallas_call(
        _drop_path_kernel,
        out_shape=jax.ShapeDtypeStruct((B, N), x.dtype),
        grid=grid,
        in_specs=[
            pl.BlockSpec((tile_b, 1), lambda bi, ni: (bi, 0)),         # scales
            pl.BlockSpec((tile_b, tile_n), lambda bi, ni: (bi, ni)),   # x
        ],
        out_specs=pl.BlockSpec((tile_b, tile_n), lambda bi, ni: (bi, ni)),
        compiler_params=pltpu.CompilerParams(
            dimension_semantics=("parallel", "parallel"),
            vmem_limit_bytes=_VMEM_LIMIT_BYTES,
        ),
        input_output_aliases=({1: 0} if donate_x else {}),
    )(scale, x_flat)

    return out_flat.reshape(x.shape)


def _check_case(x, drop_prob, seed, rtol=1e-6, atol=1e-6):
    keep_prob = 1.0 - drop_prob
    out = jax.block_until_ready(drop_path_pallas(x, drop_prob, seed, training=True))
    out_np = np.asarray(out, dtype=np.float32)
    x_np = np.asarray(x, dtype=np.float32)
    for b in range(x.shape[0]):
        is_zero = np.allclose(out_np[b], 0.0)
        is_scaled = np.allclose(out_np[b], x_np[b] / keep_prob, rtol=rtol, atol=atol)
        assert is_zero or is_scaled, f"sample {b}: not a valid drop-path output"


if __name__ == "__main__":
    key = jax.random.PRNGKey(0)

    # Small case matching the module's typical use (B, L, D).
    B, L, D = 2, 8, 32
    x = jax.random.normal(key, (B, L, D), dtype=jnp.float32)

    # Eval / drop_prob == 0: identity.
    out_eval = jax.block_until_ready(drop_path_pallas(x, 0.25, seed=0, training=False))
    np.testing.assert_allclose(np.asarray(out_eval), np.asarray(x))

    # Training path (the kernel).
    _check_case(x, drop_prob=0.25, seed=0)

    # Larger batch: exercises the sublane-dense (8, TILE_N) blocking.
    x2 = jax.random.normal(jax.random.PRNGKey(0), (16, 8, 128), dtype=jnp.float32)
    _check_case(x2, drop_prob=0.5, seed=3)

    # bf16 path: multiply stays in bf16, so use loose tolerance.
    x3 = jax.random.normal(jax.random.PRNGKey(0), (16, 8, 128), dtype=jnp.bfloat16)
    _check_case(x3, drop_prob=0.25, seed=7, rtol=1e-2, atol=1e-2)

    print("KERNEL_OK")
</pallas_src>

<mosaic_0001>
module attributes {stable_mosaic.version = 11 : i64} {
  func.func @_drop_path_kernel(%arg0: i32, %arg1: i32, %arg2: memref<2x1xf32, #tpu.memory_space<vmem>>, %arg3: memref<2x256xf32, #tpu.memory_space<vmem>>, %arg4: memref<2x256xf32, #tpu.memory_space<vmem>>) attributes {dimension_semantics = [#tpu.dimension_semantics<parallel>, #tpu.dimension_semantics<parallel>], iteration_bounds = array<i64: 1, 1>, scalar_prefetch = 0 : i64, scratch_operands = 0 : i64, tpu.core_type = #tpu.core_type<tc>, window_params = [{transform_indices = @transform_0, window_bounds = array<i64: 2, 1>}, {transform_indices = @transform_1, window_bounds = array<i64: 2, 256>}, {transform_indices = @transform_2, window_bounds = array<i64: 2, 256>}]} {
    %c0 = arith.constant 0 : index
    %c0_0 = arith.constant 0 : index
    %0 = vector.load %arg2[%c0, %c0_0] : memref<2x1xf32, #tpu.memory_space<vmem>>, vector<2x1xf32>
    %c0_1 = arith.constant 0 : index
    %c0_2 = arith.constant 0 : index
    %1 = vector.load %arg3[%c0_1, %c0_2] : memref<2x256xf32, #tpu.memory_space<vmem>>, vector<2x256xf32>
    %2 = vector.broadcast %0 : vector<2x1xf32> to vector<2x256xf32>
    %3 = arith.mulf %1, %2 : vector<2x256xf32>
    %c0_3 = arith.constant 0 : index
    %c0_4 = arith.constant 0 : index
    %4 = vector.load %arg4[%c0_3, %c0_4] : memref<2x256xf32, #tpu.memory_space<vmem>>, vector<2x256xf32>
    tpu.vector_store %arg4[%c0_3, %c0_4], %3 {strides = array<i32>} : memref<2x256xf32, #tpu.memory_space<vmem>>, vector<2x256xf32>,
    return
  }
  func.func @transform_0(%arg0: i32, %arg1: i32) -> (i32, i32) {
    %c0_i32 = arith.constant 0 : i32
    %c0_i32_0 = arith.constant 0 : i32
    return %arg0, %c0_i32 : i32, i32
  }
  func.func @transform_1(%arg0: i32, %arg1: i32) -> (i32, i32) {
    %c0_i32 = arith.constant 0 : i32
    return %arg0, %arg1 : i32, i32
  }
  func.func @transform_2(%arg0: i32, %arg1: i32) -> (i32, i32) {
    %c0_i32 = arith.constant 0 : i32
    return %arg0, %arg1 : i32, i32
  }
}

</mosaic_0001>

<bundles_post_ra>
// kernel: tpu_custom_call.1
= control target key start
LH: loop header
LB: loop body
LE: loop exit
PB: predicated region body
PF: predicated region fallthrough
CT: control target
= control target key end

     0   :  { %v68_v1 = vmov 0   ;;  %s95_s0 = inlined_call_operand.vmem [shape: f32[2,1], index: 0, kind: input, shape index: {}]   ;;  %s96_s1 = inlined_call_operand.vmem [shape: f32[2,256], index: 1, kind: input, shape index: {}]   ;;  %s97_s2 = inlined_call_operand.hbm [shape: f32[2,256], index: 2, kind: output, shape index: {}]  }
   0x1   :  { %v12_v0 = vld [vmem:[%s95_s0] sm:$0x3]  ;;  %45 = vset.pattern.permute.xlu0 %v68_v1 }
   0x2   :  { %7 = vsyncpa [#allocation3], 0  ;;  %16 = vperm.xlu0 %45, %v12_v0   ;;  %v69_v2 = vmov 269488144   ;;  %v21_v4 = vlaneseq  ;;  %v13_v9 = vld [vmem:[%s96_s1] sm:$0xf] }
   0x3   :  { %v19_v3 = vunpack.c.l.s4 %v69_v2  ;;  %s70_s13 = smov [#allocation2]  }
   0x4   :  { %v22_v6 = vshrl.u32 %v21_v4, 7  ;;  %s34_s14 = sshll.u32 %s70_s13, 4  ;;  %s35_s14 = int_to_ptr.vmem [resolvable:$true] %s34_s14 }
   0x5   :  { %v20_v5 = vunpack.c.0.s8 %v19_v3  ;;  %s46_s0 = scalar_lea.vmem %s35_s14, 64  ;;  %p51_p1 = scmp.lt.s32.totalorder %s35_s14, %s35_s14 }
   0x6   :  { %p47_p0 = scmp.ne.s32.totalorder %s35_s14, %s46_s0  ;;  %p52_p2 = scmp.lt.s32.totalorder %s46_s0, %s46_s0 }
   0x7   :  { %v23_v7 = vsub.s32 %v20_v5, %v22_v6 }
   0x8   :  { %p53_p3 = por %p52_p2, %p51_p1 }
   0xa   :  { %p54_p4 = pnand %p53_p3, %p47_p0 }
  0x7d   :  { %v17_v8 = vpop.permute.xlu0 %16 }
  0x7e   :  { %v24_v10 = vrot.slane %v17_v8, %v23_v7 }
  0x80   :  { %v26_v11 = vmul.f32 %v24_v10, %v13_v9 }
  0x82   :  { %27 = vst [vmem:[#allocation2] sm:$0xf] %v26_v11 }
  0x83   :  { %57 = shalt.err (!%p54_p4)
}
  0x84   :  { %37 = dma.vmem_to_hbm [thread:$0]  %s35_s14, 64, %s97_s2, [#allocation3]  }
  0x85   :  { %66 = dma.done.wait [#allocation3], 64  }
  0x86   :  { %67 = vsyncadd [#allocation3], 4294967232 }
  0x87   :  { %41 = vsyncpa [#allocation3], 1 }

</bundles_post_ra>
